<compile_context>
chip_gen: v5e
topology: v5e:2x2
jax: 0.10.0
libtpu: 0.0.40
codegen_flags: <defaults>
</compile_context>

<pallas_src>
import functools
import math

import jax
import jax.numpy as jnp
from jax import lax
from jax.experimental import pallas as pl
from jax.experimental.pallas import tpu as pltpu

LN_EPS = 1e-5


def _round_up(x, m):
    return (x + m - 1) // m * m


def _seq_embed_kernel(ids_ref,    # SMEM (B * s_pad,) int32      (scalar prefetch)
                      emb_ref,    # (V, D) table: VMEM block (fast path) or HBM (pl.ANY)
                      pe_ref,     # VMEM (tile_s, D) f32         positional encodings
                      gamma_ref,  # VMEM (1, D) f32              LayerNorm weight
                      beta_ref,   # VMEM (1, D) f32              LayerNorm bias
                      out_ref,    # VMEM (1, tile_s, D)          output slab
                      gbuf,       # VMEM (2*chunk, D) table dtype gather buffer (2 slots)
                      sem,        # DMA semaphores (2*chunk,)
                      *, s_pad, tile_s, chunk, n_chunks, vocab, scale, inv_d):
    st = pl.program_id(0)          # seq-tile axis (outer)
    b = pl.program_id(1)           # batch axis (inner -> PE block reused across b)
    base = b * s_pad + st * tile_s

    def tok_at(idx):
        # Scalar-path read + clamp: out-of-range ids must not become arbitrary
        # HBM DMA offsets.
        t = ids_ref[base + idx]
        return jnp.minimum(jnp.maximum(t, 0), vocab - 1)

    def row_copy(c, r, slot):
        # Identical descriptor for start and wait (real-descriptor waits).
        tok = tok_at(c * chunk + r)
        return pltpu.make_async_copy(
            emb_ref.at[pl.ds(tok, 1)],
            gbuf.at[pl.ds(slot * chunk + r, 1)],
            sem.at[slot * chunk + r])

    def start_chunk(c, slot):
        for r in range(chunk):
            row_copy(c, r, slot).start()

    def wait_chunk(c, slot):
        for r in range(chunk):
            row_copy(c, r, slot).wait()

    # Hoist LN affine params out of the chunk loop.
    g = gamma_ref[...]
    bta = beta_ref[...]

    # Prime the pipeline: issue chunk 0 into slot 0.
    start_chunk(0, 0)

    @pl.loop(0, n_chunks)
    def _(c):
        slot = c & 1

        # Overlap: issue chunk c+1's gather DMAs before waiting on chunk c.
        @pl.when(c + 1 < n_chunks)
        def _():
            start_chunk(c + 1, 1 - slot)

        wait_chunk(c, slot)

        src0 = pl.multiple_of(slot * chunk, chunk)
        rows = gbuf[pl.ds(src0, chunk), :].astype(jnp.float32)      # (chunk, D)

        row0 = pl.multiple_of(c * chunk, chunk)
        x = rows * jnp.float32(scale) + pe_ref[pl.ds(row0, chunk), :]

        # LayerNorm over features: single-pass sums * (1/D), rsqrt on the EUP.
        mean = jnp.sum(x, axis=-1, keepdims=True) * jnp.float32(inv_d)
        cen = x - mean
        var = jnp.sum(cen * cen, axis=-1, keepdims=True) * jnp.float32(inv_d)
        y = cen * lax.rsqrt(var + jnp.float32(LN_EPS))
        y = y * g + bta

        out_ref[0, pl.ds(row0, chunk), :] = y.astype(out_ref.dtype)


def sequence_embedding(sequences, emb_table, pe, gamma, beta, *,
                       tile_s=256,
                       table_vmem_budget_bytes=12 * 1024 * 1024,
                       out_dtype=jnp.float32):
    """sequences: (B, S) int token ids; returns (B, S, D) in out_dtype."""
    B, S = sequences.shape
    V, D = emb_table.shape

    ts = min(tile_s, _round_up(S, 8))        # sublane-aligned seq tile
    ts = _round_up(ts, 8)
    s_pad = _round_up(S, ts)
    n_s_tiles = s_pad // ts
    chunk = 16 if ts % 16 == 0 else 8        # 16-32 in-flight row DMAs max
    n_chunks = ts // chunk

    ids = sequences.astype(jnp.int32)
    pe_use = pe[:S].astype(jnp.float32)
    if s_pad != S:
        # Pad with token 0 (valid row); padded rows are sliced off below.
        ids = jnp.pad(ids, ((0, 0), (0, s_pad - S)))
        pe_use = jnp.pad(pe_use, ((0, s_pad - S), (0, 0)))
    ids_flat = ids.reshape(B * s_pad)

    gamma2 = jnp.reshape(gamma, (1, D)).astype(jnp.float32)
    beta2 = jnp.reshape(beta, (1, D)).astype(jnp.float32)

    # VMEM-resident fast path: table held as one VMEM block (read from HBM once
    # for the whole kernel; row copies become local VMEM->VMEM).  Budget kept
    # conservative (12 MiB -> ~24 MiB with double-buffering) for v7x's 64 MiB.
    table_bytes = V * D * emb_table.dtype.itemsize
    resident = table_bytes <= table_vmem_budget_bytes
    if resident:
        emb_spec = pl.BlockSpec((V, D), lambda st, b, ids: (0, 0))
    else:
        emb_spec = pl.BlockSpec(memory_space=pl.ANY)   # stays in HBM

    # Explicit VMEM budget (inputs/outputs are double-buffered by Pallas).
    vmem_need = ((2 * table_bytes if resident else 0)
                 + 2 * ts * D * 4            # PE tile
                 + 2 * ts * D * jnp.dtype(out_dtype).itemsize   # out tile
                 + 2 * chunk * D * emb_table.dtype.itemsize     # gather buffer
                 + 4 * D * 4)                # gamma/beta
    vmem_limit = int(min(max(vmem_need + (8 << 20), 32 << 20), 64 << 20))

    kernel = functools.partial(
        _seq_embed_kernel,
        s_pad=s_pad, tile_s=ts, chunk=chunk, n_chunks=n_chunks, vocab=V,
        scale=float(math.sqrt(D)), inv_d=float(1.0 / D))

    out = pl.pallas_call(
        kernel,
        out_shape=jax.ShapeDtypeStruct((B, s_pad, D), out_dtype),
        grid_spec=pltpu.PrefetchScalarGridSpec(
            num_scalar_prefetch=1,           # ids -> SMEM (scalar path)
            grid=(n_s_tiles, B),             # seq tile outer, batch inner
            in_specs=[
                emb_spec,                                            # emb table
                pl.BlockSpec((ts, D), lambda st, b, ids: (st, 0)),   # PE tile (reused over b)
                pl.BlockSpec((1, D), lambda st, b, ids: (0, 0)),     # LN gamma
                pl.BlockSpec((1, D), lambda st, b, ids: (0, 0)),     # LN beta
            ],
            out_specs=pl.BlockSpec((1, ts, D), lambda st, b, ids: (b, st, 0)),
            scratch_shapes=[
                pltpu.VMEM((2 * chunk, D), emb_table.dtype),  # 2-slot gather buffer
                pltpu.SemaphoreType.DMA((2 * chunk,)),        # per-row/per-slot sems
            ]),
        compiler_params=pltpu.CompilerParams(
            dimension_semantics=("parallel", "parallel"),
            vmem_limit_bytes=vmem_limit),
    )(ids_flat, emb_table, pe_use, gamma2, beta2)

    return out[:, :S, :]


def make_positional_encoding(seq_len, embed_dim):
    position = jnp.arange(seq_len, dtype=jnp.float32)[:, None]              # (S, 1)
    div_term = jnp.exp(jnp.arange(0, embed_dim, 2, dtype=jnp.float32)
                       * (-math.log(10000.0) / embed_dim))                  # (D/2,)
    angles = position * div_term                                            # (S, D/2)
    pe = jnp.zeros((seq_len, embed_dim), dtype=jnp.float32)
    pe = pe.at[:, 0::2].set(jnp.sin(angles))
    pe = pe.at[:, 1::2].set(jnp.cos(angles))
    return pe


def reference(sequences, emb_table, pe, gamma, beta):
    D = emb_table.shape[1]
    x = emb_table[sequences] * math.sqrt(D)          # (B, S, D)
    x = x + pe[None, :, :]
    mean = jnp.mean(x, axis=-1, keepdims=True)
    var = jnp.mean((x - mean) ** 2, axis=-1, keepdims=True)
    return (x - mean) / jnp.sqrt(var + LN_EPS) * gamma.reshape(1, 1, D) \
        + beta.reshape(1, 1, D)


if __name__ == "__main__":
    batch, seq_len = 2, 8
    vocab_size, embed_dim = 32, 32
    padding_idx = 0

    key = jax.random.PRNGKey(0)
    k_ids, k_emb = jax.random.split(key)

    # Ids lie in [0, vocab_size), matching nn.Embedding.
    sequences = jax.random.randint(k_ids, (batch, seq_len), 0, vocab_size,
                                   dtype=jnp.int32)
    # nn.Embedding default init N(0,1); padding_idx row zeroed (inference-only
    # semantics: PyTorch also zeros grads for that row, irrelevant here).
    emb_table = jax.random.normal(k_emb, (vocab_size, embed_dim),
                                  dtype=jnp.float32)
    emb_table = emb_table.at[padding_idx].set(0.0)

    pe = make_positional_encoding(seq_len, embed_dim)
    gamma = jnp.ones((1, embed_dim), dtype=jnp.float32)   # LayerNorm weight
    beta = jnp.zeros((1, embed_dim), dtype=jnp.float32)   # LayerNorm bias

    ref = reference(sequences, emb_table, pe, gamma, beta)

    # Fast path: table resident in VMEM (local VMEM->VMEM row copies).
    out_fast = sequence_embedding(sequences, emb_table, pe, gamma, beta)
    out_fast = jax.block_until_ready(out_fast)
    assert out_fast.shape == (batch, seq_len, embed_dim)
    assert jnp.allclose(out_fast, ref, atol=1e-4, rtol=1e-4)

    # Big-table path: force the table to stay in HBM (pl.ANY) and gather via
    # chunked double-buffered HBM row DMAs.
    out_hbm = sequence_embedding(sequences, emb_table, pe, gamma, beta,
                                 table_vmem_budget_bytes=0)
    out_hbm = jax.block_until_ready(out_hbm)
    assert jnp.allclose(out_hbm, ref, atol=1e-4, rtol=1e-4)

    print("KERNEL_OK")
</pallas_src>

<mosaic_0001>
module attributes {stable_mosaic.version = 11 : i64} {
  func.func @_seq_embed_kernel(%arg0: i32, %arg1: i32, %arg2: memref<16xi32, #tpu.memory_space<smem>>, %arg3: memref<32x32xf32, #tpu.memory_space<vmem>>, %arg4: memref<8x32xf32, #tpu.memory_space<vmem>>, %arg5: memref<1x32xf32, #tpu.memory_space<vmem>>, %arg6: memref<1x32xf32, #tpu.memory_space<vmem>>, %arg7: memref<1x8x32xf32, #tpu.memory_space<vmem>>, %arg8: memref<16x32xf32, #tpu.memory_space<vmem>>, %arg9: memref<16x!tpu.dma_semaphore, #tpu.memory_space<semaphore_mem>>) attributes {dimension_semantics = [#tpu.dimension_semantics<parallel>, #tpu.dimension_semantics<parallel>], iteration_bounds = array<i64: 1, 2>, scalar_prefetch = 1 : i64, scratch_operands = 2 : i64, tpu.core_type = #tpu.core_type<tc>, window_params = [{pipeline_mode = #tpu.pipeline_mode<synchronous>, transform_indices = @transform_0, window_bounds = array<i64: 32, 32>}, {transform_indices = @transform_1, window_bounds = array<i64: 8, 32>}, {pipeline_mode = #tpu.pipeline_mode<synchronous>, transform_indices = @transform_2, window_bounds = array<i64: 1, 32>}, {pipeline_mode = #tpu.pipeline_mode<synchronous>, transform_indices = @transform_3, window_bounds = array<i64: 1, 32>}, {transform_indices = @transform_4, window_bounds = array<i64: 1, 8, 32>}]} {
    %c8_i32 = arith.constant 8 : i32
    %0 = arith.muli %arg1, %c8_i32 : i32
    %c8_i32_0 = arith.constant 8 : i32
    %1 = arith.muli %arg0, %c8_i32_0 : i32
    %2 = arith.addi %0, %1 : i32
    %c0 = arith.constant 0 : index
    %c0_1 = arith.constant 0 : index
    %3 = vector.load %arg5[%c0, %c0_1] : memref<1x32xf32, #tpu.memory_space<vmem>>, vector<1x32xf32>
    %c0_2 = arith.constant 0 : index
    %c0_3 = arith.constant 0 : index
    %4 = vector.load %arg6[%c0_2, %c0_3] : memref<1x32xf32, #tpu.memory_space<vmem>>, vector<1x32xf32>
    %c0_i32 = arith.constant 0 : i32
    %5 = arith.addi %2, %c0_i32 : i32
    %6 = arith.index_cast %5 : i32 to index
    %7 = memref.load %arg2[%6] : memref<16xi32, #tpu.memory_space<smem>>
    %c0_i32_4 = arith.constant 0 : i32
    %8 = arith.maxsi %7, %c0_i32_4 : i32
    %c31_i32 = arith.constant 31 : i32
    %9 = arith.minsi %8, %c31_i32 : i32
    %c0_i32_5 = arith.constant 0 : i32
    %c0_i32_6 = arith.constant 0 : i32
    %10 = tpu.memref_slice %arg3[%9, %c0_i32_6] : memref<32x32xf32, #tpu.memory_space<vmem>> -> memref<1x32xf32, #tpu.memory_space<vmem>>
    %c0_i32_7 = arith.constant 0 : i32
    %c0_i32_8 = arith.constant 0 : i32
    %11 = tpu.memref_slice %arg8[%c0_i32_7, %c0_i32_8] : memref<16x32xf32, #tpu.memory_space<vmem>> -> memref<1x32xf32, #tpu.memory_space<vmem>>
    %12 = tpu.memref_slice %arg9[%c0_i32_5] : memref<16x!tpu.dma_semaphore, #tpu.memory_space<semaphore_mem>> -> memref<1x!tpu.dma_semaphore, #tpu.memory_space<semaphore_mem>>
    %13 = tpu.memref_squeeze %12 : memref<1x!tpu.dma_semaphore, #tpu.memory_space<semaphore_mem>> -> memref<!tpu.dma_semaphore, #tpu.memory_space<semaphore_mem>>
    tpu.enqueue_dma source(%10 : memref<1x32xf32, #tpu.memory_space<vmem>>) target(%11 : memref<1x32xf32, #tpu.memory_space<vmem>>) target_semaphore(%13 : memref<!tpu.dma_semaphore, #tpu.memory_space<semaphore_mem>>)
    %c1_i32 = arith.constant 1 : i32
    %14 = arith.addi %2, %c1_i32 : i32
    %15 = arith.index_cast %14 : i32 to index
    %16 = memref.load %arg2[%15] : memref<16xi32, #tpu.memory_space<smem>>
    %c0_i32_9 = arith.constant 0 : i32
    %17 = arith.maxsi %16, %c0_i32_9 : i32
    %c31_i32_10 = arith.constant 31 : i32
    %18 = arith.minsi %17, %c31_i32_10 : i32
    %c1_i32_11 = arith.constant 1 : i32
    %c0_i32_12 = arith.constant 0 : i32
    %19 = tpu.memref_slice %arg3[%18, %c0_i32_12] : memref<32x32xf32, #tpu.memory_space<vmem>> -> memref<1x32xf32, #tpu.memory_space<vmem>>
    %c1_i32_13 = arith.constant 1 : i32
    %c0_i32_14 = arith.constant 0 : i32
    %20 = tpu.memref_slice %arg8[%c1_i32_13, %c0_i32_14] : memref<16x32xf32, #tpu.memory_space<vmem>> -> memref<1x32xf32, #tpu.memory_space<vmem>>
    %21 = tpu.memref_slice %arg9[%c1_i32_11] : memref<16x!tpu.dma_semaphore, #tpu.memory_space<semaphore_mem>> -> memref<1x!tpu.dma_semaphore, #tpu.memory_space<semaphore_mem>>
    %22 = tpu.memref_squeeze %21 : memref<1x!tpu.dma_semaphore, #tpu.memory_space<semaphore_mem>> -> memref<!tpu.dma_semaphore, #tpu.memory_space<semaphore_mem>>
    tpu.enqueue_dma source(%19 : memref<1x32xf32, #tpu.memory_space<vmem>>) target(%20 : memref<1x32xf32, #tpu.memory_space<vmem>>) target_semaphore(%22 : memref<!tpu.dma_semaphore, #tpu.memory_space<semaphore_mem>>)
    %c2_i32 = arith.constant 2 : i32
    %23 = arith.addi %2, %c2_i32 : i32
    %24 = arith.index_cast %23 : i32 to index
    %25 = memref.load %arg2[%24] : memref<16xi32, #tpu.memory_space<smem>>
    %c0_i32_15 = arith.constant 0 : i32
    %26 = arith.maxsi %25, %c0_i32_15 : i32
    %c31_i32_16 = arith.constant 31 : i32
    %27 = arith.minsi %26, %c31_i32_16 : i32
    %c2_i32_17 = arith.constant 2 : i32
    %c0_i32_18 = arith.constant 0 : i32
    %28 = tpu.memref_slice %arg3[%27, %c0_i32_18] : memref<32x32xf32, #tpu.memory_space<vmem>> -> memref<1x32xf32, #tpu.memory_space<vmem>>
    %c2_i32_19 = arith.constant 2 : i32
    %c0_i32_20 = arith.constant 0 : i32
    %29 = tpu.memref_slice %arg8[%c2_i32_19, %c0_i32_20] : memref<16x32xf32, #tpu.memory_space<vmem>> -> memref<1x32xf32, #tpu.memory_space<vmem>>
    %30 = tpu.memref_slice %arg9[%c2_i32_17] : memref<16x!tpu.dma_semaphore, #tpu.memory_space<semaphore_mem>> -> memref<1x!tpu.dma_semaphore, #tpu.memory_space<semaphore_mem>>
    %31 = tpu.memref_squeeze %30 : memref<1x!tpu.dma_semaphore, #tpu.memory_space<semaphore_mem>> -> memref<!tpu.dma_semaphore, #tpu.memory_space<semaphore_mem>>
    tpu.enqueue_dma source(%28 : memref<1x32xf32, #tpu.memory_space<vmem>>) target(%29 : memref<1x32xf32, #tpu.memory_space<vmem>>) target_semaphore(%31 : memref<!tpu.dma_semaphore, #tpu.memory_space<semaphore_mem>>)
    %c3_i32 = arith.constant 3 : i32
    %32 = arith.addi %2, %c3_i32 : i32
    %33 = arith.index_cast %32 : i32 to index
    %34 = memref.load %arg2[%33] : memref<16xi32, #tpu.memory_space<smem>>
    %c0_i32_21 = arith.constant 0 : i32
    %35 = arith.maxsi %34, %c0_i32_21 : i32
    %c31_i32_22 = arith.constant 31 : i32
    %36 = arith.minsi %35, %c31_i32_22 : i32
    %c3_i32_23 = arith.constant 3 : i32
    %c0_i32_24 = arith.constant 0 : i32
    %37 = tpu.memref_slice %arg3[%36, %c0_i32_24] : memref<32x32xf32, #tpu.memory_space<vmem>> -> memref<1x32xf32, #tpu.memory_space<vmem>>
    %c3_i32_25 = arith.constant 3 : i32
    %c0_i32_26 = arith.constant 0 : i32
    %38 = tpu.memref_slice %arg8[%c3_i32_25, %c0_i32_26] : memref<16x32xf32, #tpu.memory_space<vmem>> -> memref<1x32xf32, #tpu.memory_space<vmem>>
    %39 = tpu.memref_slice %arg9[%c3_i32_23] : memref<16x!tpu.dma_semaphore, #tpu.memory_space<semaphore_mem>> -> memref<1x!tpu.dma_semaphore, #tpu.memory_space<semaphore_mem>>
    %40 = tpu.memref_squeeze %39 : memref<1x!tpu.dma_semaphore, #tpu.memory_space<semaphore_mem>> -> memref<!tpu.dma_semaphore, #tpu.memory_space<semaphore_mem>>
    tpu.enqueue_dma source(%37 : memref<1x32xf32, #tpu.memory_space<vmem>>) target(%38 : memref<1x32xf32, #tpu.memory_space<vmem>>) target_semaphore(%40 : memref<!tpu.dma_semaphore, #tpu.memory_space<semaphore_mem>>)
    %c4_i32 = arith.constant 4 : i32
    %41 = arith.addi %2, %c4_i32 : i32
    %42 = arith.index_cast %41 : i32 to index
    %43 = memref.load %arg2[%42] : memref<16xi32, #tpu.memory_space<smem>>
    %c0_i32_27 = arith.constant 0 : i32
    %44 = arith.maxsi %43, %c0_i32_27 : i32
    %c31_i32_28 = arith.constant 31 : i32
    %45 = arith.minsi %44, %c31_i32_28 : i32
    %c4_i32_29 = arith.constant 4 : i32
    %c0_i32_30 = arith.constant 0 : i32
    %46 = tpu.memref_slice %arg3[%45, %c0_i32_30] : memref<32x32xf32, #tpu.memory_space<vmem>> -> memref<1x32xf32, #tpu.memory_space<vmem>>
    %c4_i32_31 = arith.constant 4 : i32
    %c0_i32_32 = arith.constant 0 : i32
    %47 = tpu.memref_slice %arg8[%c4_i32_31, %c0_i32_32] : memref<16x32xf32, #tpu.memory_space<vmem>> -> memref<1x32xf32, #tpu.memory_space<vmem>>
    %48 = tpu.memref_slice %arg9[%c4_i32_29] : memref<16x!tpu.dma_semaphore, #tpu.memory_space<semaphore_mem>> -> memref<1x!tpu.dma_semaphore, #tpu.memory_space<semaphore_mem>>
    %49 = tpu.memref_squeeze %48 : memref<1x!tpu.dma_semaphore, #tpu.memory_space<semaphore_mem>> -> memref<!tpu.dma_semaphore, #tpu.memory_space<semaphore_mem>>
    tpu.enqueue_dma source(%46 : memref<1x32xf32, #tpu.memory_space<vmem>>) target(%47 : memref<1x32xf32, #tpu.memory_space<vmem>>) target_semaphore(%49 : memref<!tpu.dma_semaphore, #tpu.memory_space<semaphore_mem>>)
    %c5_i32 = arith.constant 5 : i32
    %50 = arith.addi %2, %c5_i32 : i32
    %51 = arith.index_cast %50 : i32 to index
    %52 = memref.load %arg2[%51] : memref<16xi32, #tpu.memory_space<smem>>
    %c0_i32_33 = arith.constant 0 : i32
    %53 = arith.maxsi %52, %c0_i32_33 : i32
    %c31_i32_34 = arith.constant 31 : i32
    %54 = arith.minsi %53, %c31_i32_34 : i32
    %c5_i32_35 = arith.constant 5 : i32
    %c0_i32_36 = arith.constant 0 : i32
    %55 = tpu.memref_slice %arg3[%54, %c0_i32_36] : memref<32x32xf32, #tpu.memory_space<vmem>> -> memref<1x32xf32, #tpu.memory_space<vmem>>
    %c5_i32_37 = arith.constant 5 : i32
    %c0_i32_38 = arith.constant 0 : i32
    %56 = tpu.memref_slice %arg8[%c5_i32_37, %c0_i32_38] : memref<16x32xf32, #tpu.memory_space<vmem>> -> memref<1x32xf32, #tpu.memory_space<vmem>>
    %57 = tpu.memref_slice %arg9[%c5_i32_35] : memref<16x!tpu.dma_semaphore, #tpu.memory_space<semaphore_mem>> -> memref<1x!tpu.dma_semaphore, #tpu.memory_space<semaphore_mem>>
    %58 = tpu.memref_squeeze %57 : memref<1x!tpu.dma_semaphore, #tpu.memory_space<semaphore_mem>> -> memref<!tpu.dma_semaphore, #tpu.memory_space<semaphore_mem>>
    tpu.enqueue_dma source(%55 : memref<1x32xf32, #tpu.memory_space<vmem>>) target(%56 : memref<1x32xf32, #tpu.memory_space<vmem>>) target_semaphore(%58 : memref<!tpu.dma_semaphore, #tpu.memory_space<semaphore_mem>>)
    %c6_i32 = arith.constant 6 : i32
    %59 = arith.addi %2, %c6_i32 : i32
    %60 = arith.index_cast %59 : i32 to index
    %61 = memref.load %arg2[%60] : memref<16xi32, #tpu.memory_space<smem>>
    %c0_i32_39 = arith.constant 0 : i32
    %62 = arith.maxsi %61, %c0_i32_39 : i32
    %c31_i32_40 = arith.constant 31 : i32
    %63 = arith.minsi %62, %c31_i32_40 : i32
    %c6_i32_41 = arith.constant 6 : i32
    %c0_i32_42 = arith.constant 0 : i32
    %64 = tpu.memref_slice %arg3[%63, %c0_i32_42] : memref<32x32xf32, #tpu.memory_space<vmem>> -> memref<1x32xf32, #tpu.memory_space<vmem>>
    %c6_i32_43 = arith.constant 6 : i32
    %c0_i32_44 = arith.constant 0 : i32
    %65 = tpu.memref_slice %arg8[%c6_i32_43, %c0_i32_44] : memref<16x32xf32, #tpu.memory_space<vmem>> -> memref<1x32xf32, #tpu.memory_space<vmem>>
    %66 = tpu.memref_slice %arg9[%c6_i32_41] : memref<16x!tpu.dma_semaphore, #tpu.memory_space<semaphore_mem>> -> memref<1x!tpu.dma_semaphore, #tpu.memory_space<semaphore_mem>>
    %67 = tpu.memref_squeeze %66 : memref<1x!tpu.dma_semaphore, #tpu.memory_space<semaphore_mem>> -> memref<!tpu.dma_semaphore, #tpu.memory_space<semaphore_mem>>
    tpu.enqueue_dma source(%64 : memref<1x32xf32, #tpu.memory_space<vmem>>) target(%65 : memref<1x32xf32, #tpu.memory_space<vmem>>) target_semaphore(%67 : memref<!tpu.dma_semaphore, #tpu.memory_space<semaphore_mem>>)
    %c7_i32 = arith.constant 7 : i32
    %68 = arith.addi %2, %c7_i32 : i32
    %69 = arith.index_cast %68 : i32 to index
    %70 = memref.load %arg2[%69] : memref<16xi32, #tpu.memory_space<smem>>
    %c0_i32_45 = arith.constant 0 : i32
    %71 = arith.maxsi %70, %c0_i32_45 : i32
    %c31_i32_46 = arith.constant 31 : i32
    %72 = arith.minsi %71, %c31_i32_46 : i32
    %c7_i32_47 = arith.constant 7 : i32
    %c0_i32_48 = arith.constant 0 : i32
    %73 = tpu.memref_slice %arg3[%72, %c0_i32_48] : memref<32x32xf32, #tpu.memory_space<vmem>> -> memref<1x32xf32, #tpu.memory_space<vmem>>
    %c7_i32_49 = arith.constant 7 : i32
    %c0_i32_50 = arith.constant 0 : i32
    %74 = tpu.memref_slice %arg8[%c7_i32_49, %c0_i32_50] : memref<16x32xf32, #tpu.memory_space<vmem>> -> memref<1x32xf32, #tpu.memory_space<vmem>>
    %75 = tpu.memref_slice %arg9[%c7_i32_47] : memref<16x!tpu.dma_semaphore, #tpu.memory_space<semaphore_mem>> -> memref<1x!tpu.dma_semaphore, #tpu.memory_space<semaphore_mem>>
    %76 = tpu.memref_squeeze %75 : memref<1x!tpu.dma_semaphore, #tpu.memory_space<semaphore_mem>> -> memref<!tpu.dma_semaphore, #tpu.memory_space<semaphore_mem>>
    tpu.enqueue_dma source(%73 : memref<1x32xf32, #tpu.memory_space<vmem>>) target(%74 : memref<1x32xf32, #tpu.memory_space<vmem>>) target_semaphore(%76 : memref<!tpu.dma_semaphore, #tpu.memory_space<semaphore_mem>>)
    %c0_i32_51 = arith.constant 0 : i32
    %c1_i32_52 = arith.constant 1 : i32
    %77 = arith.muli %c0_i32_51, %c1_i32_52 : i32
    %c0_i32_53 = arith.constant 0 : i32
    %78 = arith.addi %c0_i32_53, %77 : i32
    %c1_i32_54 = arith.constant 1 : i32
    %79 = arith.andi %78, %c1_i32_54 : i32
    %c1_i32_55 = arith.constant 1 : i32
    %80 = arith.addi %78, %c1_i32_55 : i32
    %c1_i32_56 = arith.constant 1 : i32
    %81 = arith.cmpi slt, %80, %c1_i32_56 : i32
    %82 = arith.extui %81 : i1 to i32
    %c0_i32_57 = arith.constant 0 : i32
    %83 = arith.cmpi ne, %82, %c0_i32_57 : i32
    scf.if %83 {
      %c1_i32_150 = arith.constant 1 : i32
      %239 = arith.addi %78, %c1_i32_150 : i32
      %c1_i32_151 = arith.constant 1 : i32
      %240 = arith.subi %c1_i32_151, %79 : i32
      %c8_i32_152 = arith.constant 8 : i32
      %241 = arith.muli %239, %c8_i32_152 : i32
      %c0_i32_153 = arith.constant 0 : i32
      %242 = arith.addi %241, %c0_i32_153 : i32
      %243 = arith.addi %2, %242 : i32
      %244 = arith.index_cast %243 : i32 to index
      %245 = memref.load %arg2[%244] : memref<16xi32, #tpu.memory_space<smem>>
      %c0_i32_154 = arith.constant 0 : i32
      %246 = arith.maxsi %245, %c0_i32_154 : i32
      %c31_i32_155 = arith.constant 31 : i32
      %247 = arith.minsi %246, %c31_i32_155 : i32
      %c8_i32_156 = arith.constant 8 : i32
      %248 = arith.muli %240, %c8_i32_156 : i32
      %c0_i32_157 = arith.constant 0 : i32
      %249 = arith.addi %248, %c0_i32_157 : i32
      %c8_i32_158 = arith.constant 8 : i32
      %250 = arith.muli %240, %c8_i32_158 : i32
      %c0_i32_159 = arith.constant 0 : i32
      %251 = arith.addi %250, %c0_i32_159 : i32
      %c0_i32_160 = arith.constant 0 : i32
      %252 = tpu.memref_slice %arg3[%247, %c0_i32_160] : memref<32x32xf32, #tpu.memory_space<vmem>> -> memref<1x32xf32, #tpu.memory_space<vmem>>
      %c0_i32_161 = arith.constant 0 : i32
      %253 = tpu.memref_slice %arg8[%249, %c0_i32_161] : memref<16x32xf32, #tpu.memory_space<vmem>> -> memref<1x32xf32, #tpu.memory_space<vmem>>
      %254 = tpu.memref_slice %arg9[%251] : memref<16x!tpu.dma_semaphore, #tpu.memory_space<semaphore_mem>> -> memref<1x!tpu.dma_semaphore, #tpu.memory_space<semaphore_mem>>
      %255 = tpu.memref_squeeze %254 : memref<1x!tpu.dma_semaphore, #tpu.memory_space<semaphore_mem>> -> memref<!tpu.dma_semaphore, #tpu.memory_space<semaphore_mem>>
      tpu.enqueue_dma source(%252 : memref<1x32xf32, #tpu.memory_space<vmem>>) target(%253 : memref<1x32xf32, #tpu.memory_space<vmem>>) target_semaphore(%255 : memref<!tpu.dma_semaphore, #tpu.memory_space<semaphore_mem>>)
      %c8_i32_162 = arith.constant 8 : i32
      %256 = arith.muli %239, %c8_i32_162 : i32
      %c1_i32_163 = arith.constant 1 : i32
      %257 = arith.addi %256, %c1_i32_163 : i32
      %258 = arith.addi %2, %257 : i32
      %259 = arith.index_cast %258 : i32 to index
      %260 = memref.load %arg2[%259] : memref<16xi32, #tpu.memory_space<smem>>
      %c0_i32_164 = arith.constant 0 : i32
      %261 = arith.maxsi %260, %c0_i32_164 : i32
      %c31_i32_165 = arith.constant 31 : i32
      %262 = arith.minsi %261, %c31_i32_165 : i32
      %c8_i32_166 = arith.constant 8 : i32
      %263 = arith.muli %240, %c8_i32_166 : i32
      %c1_i32_167 = arith.constant 1 : i32
      %264 = arith.addi %263, %c1_i32_167 : i32
      %c8_i32_168 = arith.constant 8 : i32
      %265 = arith.muli %240, %c8_i32_168 : i32
      %c1_i32_169 = arith.constant 1 : i32
      %266 = arith.addi %265, %c1_i32_169 : i32
      %c0_i32_170 = arith.constant 0 : i32
      %267 = tpu.memref_slice %arg3[%262, %c0_i32_170] : memref<32x32xf32, #tpu.memory_space<vmem>> -> memref<1x32xf32, #tpu.memory_space<vmem>>
      %c0_i32_171 = arith.constant 0 : i32
      %268 = tpu.memref_slice %arg8[%264, %c0_i32_171] : memref<16x32xf32, #tpu.memory_space<vmem>> -> memref<1x32xf32, #tpu.memory_space<vmem>>
      %269 = tpu.memref_slice %arg9[%266] : memref<16x!tpu.dma_semaphore, #tpu.memory_space<semaphore_mem>> -> memref<1x!tpu.dma_semaphore, #tpu.memory_space<semaphore_mem>>
      %270 = tpu.memref_squeeze %269 : memref<1x!tpu.dma_semaphore, #tpu.memory_space<semaphore_mem>> -> memref<!tpu.dma_semaphore, #tpu.memory_space<semaphore_mem>>
      tpu.enqueue_dma source(%267 : memref<1x32xf32, #tpu.memory_space<vmem>>) target(%268 : memref<1x32xf32, #tpu.memory_space<vmem>>) target_semaphore(%270 : memref<!tpu.dma_semaphore, #tpu.memory_space<semaphore_mem>>)
      %c8_i32_172 = arith.constant 8 : i32
      %271 = arith.muli %239, %c8_i32_172 : i32
      %c2_i32_173 = arith.constant 2 : i32
      %272 = arith.addi %271, %c2_i32_173 : i32
      %273 = arith.addi %2, %272 : i32
      %274 = arith.index_cast %273 : i32 to index
      %275 = memref.load %arg2[%274] : memref<16xi32, #tpu.memory_space<smem>>
      %c0_i32_174 = arith.constant 0 : i32
      %276 = arith.maxsi %275, %c0_i32_174 : i32
      %c31_i32_175 = arith.constant 31 : i32
      %277 = arith.minsi %276, %c31_i32_175 : i32
      %c8_i32_176 = arith.constant 8 : i32
      %278 = arith.muli %240, %c8_i32_176 : i32
      %c2_i32_177 = arith.constant 2 : i32
      %279 = arith.addi %278, %c2_i32_177 : i32
      %c8_i32_178 = arith.constant 8 : i32
      %280 = arith.muli %240, %c8_i32_178 : i32
      %c2_i32_179 = arith.constant 2 : i32
      %281 = arith.addi %280, %c2_i32_179 : i32
      %c0_i32_180 = arith.constant 0 : i32
      %282 = tpu.memref_slice %arg3[%277, %c0_i32_180] : memref<32x32xf32, #tpu.memory_space<vmem>> -> memref<1x32xf32, #tpu.memory_space<vmem>>
      %c0_i32_181 = arith.constant 0 : i32
      %283 = tpu.memref_slice %arg8[%279, %c0_i32_181] : memref<16x32xf32, #tpu.memory_space<vmem>> -> memref<1x32xf32, #tpu.memory_space<vmem>>
      %284 = tpu.memref_slice %arg9[%281] : memref<16x!tpu.dma_semaphore, #tpu.memory_space<semaphore_mem>> -> memref<1x!tpu.dma_semaphore, #tpu.memory_space<semaphore_mem>>
      %285 = tpu.memref_squeeze %284 : memref<1x!tpu.dma_semaphore, #tpu.memory_space<semaphore_mem>> -> memref<!tpu.dma_semaphore, #tpu.memory_space<semaphore_mem>>
      tpu.enqueue_dma source(%282 : memref<1x32xf32, #tpu.memory_space<vmem>>) target(%283 : memref<1x32xf32, #tpu.memory_space<vmem>>) target_semaphore(%285 : memref<!tpu.dma_semaphore, #tpu.memory_space<semaphore_mem>>)
      %c8_i32_182 = arith.constant 8 : i32
      %286 = arith.muli %239, %c8_i32_182 : i32
      %c3_i32_183 = arith.constant 3 : i32
      %287 = arith.addi %286, %c3_i32_183 : i32
      %288 = arith.addi %2, %287 : i32
      %289 = arith.index_cast %288 : i32 to index
      %290 = memref.load %arg2[%289] : memref<16xi32, #tpu.memory_space<smem>>
      %c0_i32_184 = arith.constant 0 : i32
      %291 = arith.maxsi %290, %c0_i32_184 : i32
      %c31_i32_185 = arith.constant 31 : i32
      %292 = arith.minsi %291, %c31_i32_185 : i32
      %c8_i32_186 = arith.constant 8 : i32
      %293 = arith.muli %240, %c8_i32_186 : i32
      %c3_i32_187 = arith.constant 3 : i32
      %294 = arith.addi %293, %c3_i32_187 : i32
      %c8_i32_188 = arith.constant 8 : i32
      %295 = arith.muli %240, %c8_i32_188 : i32
      %c3_i32_189 = arith.constant 3 : i32
      %296 = arith.addi %295, %c3_i32_189 : i32
      %c0_i32_190 = arith.constant 0 : i32
      %297 = tpu.memref_slice %arg3[%292, %c0_i32_190] : memref<32x32xf32, #tpu.memory_space<vmem>> -> memref<1x32xf32, #tpu.memory_space<vmem>>
      %c0_i32_191 = arith.constant 0 : i32
      %298 = tpu.memref_slice %arg8[%294, %c0_i32_191] : memref<16x32xf32, #tpu.memory_space<vmem>> -> memref<1x32xf32, #tpu.memory_space<vmem>>
      %299 = tpu.memref_slice %arg9[%296] : memref<16x!tpu.dma_semaphore, #tpu.memory_space<semaphore_mem>> -> memref<1x!tpu.dma_semaphore, #tpu.memory_space<semaphore_mem>>
      %300 = tpu.memref_squeeze %299 : memref<1x!tpu.dma_semaphore, #tpu.memory_space<semaphore_mem>> -> memref<!tpu.dma_semaphore, #tpu.memory_space<semaphore_mem>>
      tpu.enqueue_dma source(%297 : memref<1x32xf32, #tpu.memory_space<vmem>>) target(%298 : memref<1x32xf32, #tpu.memory_space<vmem>>) target_semaphore(%300 : memref<!tpu.dma_semaphore, #tpu.memory_space<semaphore_mem>>)
      %c8_i32_192 = arith.constant 8 : i32
      %301 = arith.muli %239, %c8_i32_192 : i32
      %c4_i32_193 = arith.constant 4 : i32
      %302 = arith.addi %301, %c4_i32_193 : i32
      %303 = arith.addi %2, %302 : i32
      %304 = arith.index_cast %303 : i32 to index
      %305 = memref.load %arg2[%304] : memref<16xi32, #tpu.memory_space<smem>>
      %c0_i32_194 = arith.constant 0 : i32
      %306 = arith.maxsi %305, %c0_i32_194 : i32
      %c31_i32_195 = arith.constant 31 : i32
      %307 = arith.minsi %306, %c31_i32_195 : i32
      %c8_i32_196 = arith.constant 8 : i32
      %308 = arith.muli %240, %c8_i32_196 : i32
      %c4_i32_197 = arith.constant 4 : i32
      %309 = arith.addi %308, %c4_i32_197 : i32
      %c8_i32_198 = arith.constant 8 : i32
      %310 = arith.muli %240, %c8_i32_198 : i32
      %c4_i32_199 = arith.constant 4 : i32
      %311 = arith.addi %310, %c4_i32_199 : i32
      %c0_i32_200 = arith.constant 0 : i32
      %312 = tpu.memref_slice %arg3[%307, %c0_i32_200] : memref<32x32xf32, #tpu.memory_space<vmem>> -> memref<1x32xf32, #tpu.memory_space<vmem>>
      %c0_i32_201 = arith.constant 0 : i32
      %313 = tpu.memref_slice %arg8[%309, %c0_i32_201] : memref<16x32xf32, #tpu.memory_space<vmem>> -> memref<1x32xf32, #tpu.memory_space<vmem>>
      %314 = tpu.memref_slice %arg9[%311] : memref<16x!tpu.dma_semaphore, #tpu.memory_space<semaphore_mem>> -> memref<1x!tpu.dma_semaphore, #tpu.memory_space<semaphore_mem>>
      %315 = tpu.memref_squeeze %314 : memref<1x!tpu.dma_semaphore, #tpu.memory_space<semaphore_mem>> -> memref<!tpu.dma_semaphore, #tpu.memory_space<semaphore_mem>>
      tpu.enqueue_dma source(%312 : memref<1x32xf32, #tpu.memory_space<vmem>>) target(%313 : memref<1x32xf32, #tpu.memory_space<vmem>>) target_semaphore(%315 : memref<!tpu.dma_semaphore, #tpu.memory_space<semaphore_mem>>)
      %c8_i32_202 = arith.constant 8 : i32
      %316 = arith.muli %239, %c8_i32_202 : i32
      %c5_i32_203 = arith.constant 5 : i32
      %317 = arith.addi %316, %c5_i32_203 : i32
      %318 = arith.addi %2, %317 : i32
      %319 = arith.index_cast %318 : i32 to index
      %320 = memref.load %arg2[%319] : memref<16xi32, #tpu.memory_space<smem>>
      %c0_i32_204 = arith.constant 0 : i32
      %321 = arith.maxsi %320, %c0_i32_204 : i32
      %c31_i32_205 = arith.constant 31 : i32
      %322 = arith.minsi %321, %c31_i32_205 : i32
      %c8_i32_206 = arith.constant 8 : i32
      %323 = arith.muli %240, %c8_i32_206 : i32
      %c5_i32_207 = arith.constant 5 : i32
      %324 = arith.addi %323, %c5_i32_207 : i32
      %c8_i32_208 = arith.constant 8 : i32
      %325 = arith.muli %240, %c8_i32_208 : i32
      %c5_i32_209 = arith.constant 5 : i32
      %326 = arith.addi %325, %c5_i32_209 : i32
      %c0_i32_210 = arith.constant 0 : i32
      %327 = tpu.memref_slice %arg3[%322, %c0_i32_210] : memref<32x32xf32, #tpu.memory_space<vmem>> -> memref<1x32xf32, #tpu.memory_space<vmem>>
      %c0_i32_211 = arith.constant 0 : i32
      %328 = tpu.memref_slice %arg8[%324, %c0_i32_211] : memref<16x32xf32, #tpu.memory_space<vmem>> -> memref<1x32xf32, #tpu.memory_space<vmem>>
      %329 = tpu.memref_slice %arg9[%326] : memref<16x!tpu.dma_semaphore, #tpu.memory_space<semaphore_mem>> -> memref<1x!tpu.dma_semaphore, #tpu.memory_space<semaphore_mem>>
      %330 = tpu.memref_squeeze %329 : memref<1x!tpu.dma_semaphore, #tpu.memory_space<semaphore_mem>> -> memref<!tpu.dma_semaphore, #tpu.memory_space<semaphore_mem>>
      tpu.enqueue_dma source(%327 : memref<1x32xf32, #tpu.memory_space<vmem>>) target(%328 : memref<1x32xf32, #tpu.memory_space<vmem>>) target_semaphore(%330 : memref<!tpu.dma_semaphore, #tpu.memory_space<semaphore_mem>>)
      %c8_i32_212 = arith.constant 8 : i32
      %331 = arith.muli %239, %c8_i32_212 : i32
      %c6_i32_213 = arith.constant 6 : i32
      %332 = arith.addi %331, %c6_i32_213 : i32
      %333 = arith.addi %2, %332 : i32
      %334 = arith.index_cast %333 : i32 to index
      %335 = memref.load %arg2[%334] : memref<16xi32, #tpu.memory_space<smem>>
      %c0_i32_214 = arith.constant 0 : i32
      %336 = arith.maxsi %335, %c0_i32_214 : i32
      %c31_i32_215 = arith.constant 31 : i32
      %337 = arith.minsi %336, %c31_i32_215 : i32
      %c8_i32_216 = arith.constant 8 : i32
      %338 = arith.muli %240, %c8_i32_216 : i32
      %c6_i32_217 = arith.constant 6 : i32
      %339 = arith.addi %338, %c6_i32_217 : i32
      %c8_i32_218 = arith.constant 8 : i32
      %340 = arith.muli %240, %c8_i32_218 : i32
      %c6_i32_219 = arith.constant 6 : i32
      %341 = arith.addi %340, %c6_i32_219 : i32
      %c0_i32_220 = arith.constant 0 : i32
      %342 = tpu.memref_slice %arg3[%337, %c0_i32_220] : memref<32x32xf32, #tpu.memory_space<vmem>> -> memref<1x32xf32, #tpu.memory_space<vmem>>
      %c0_i32_221 = arith.constant 0 : i32
      %343 = tpu.memref_slice %arg8[%339, %c0_i32_221] : memref<16x32xf32, #tpu.memory_space<vmem>> -> memref<1x32xf32, #tpu.memory_space<vmem>>
      %344 = tpu.memref_slice %arg9[%341] : memref<16x!tpu.dma_semaphore, #tpu.memory_space<semaphore_mem>> -> memref<1x!tpu.dma_semaphore, #tpu.memory_space<semaphore_mem>>
      %345 = tpu.memref_squeeze %344 : memref<1x!tpu.dma_semaphore, #tpu.memory_space<semaphore_mem>> -> memref<!tpu.dma_semaphore, #tpu.memory_space<semaphore_mem>>
      tpu.enqueue_dma source(%342 : memref<1x32xf32, #tpu.memory_space<vmem>>) target(%343 : memref<1x32xf32, #tpu.memory_space<vmem>>) target_semaphore(%345 : memref<!tpu.dma_semaphore, #tpu.memory_space<semaphore_mem>>)
      %c8_i32_222 = arith.constant 8 : i32
      %346 = arith.muli %239, %c8_i32_222 : i32
      %c7_i32_223 = arith.constant 7 : i32
      %347 = arith.addi %346, %c7_i32_223 : i32
      %348 = arith.addi %2, %347 : i32
      %349 = arith.index_cast %348 : i32 to index
      %350 = memref.load %arg2[%349] : memref<16xi32, #tpu.memory_space<smem>>
      %c0_i32_224 = arith.constant 0 : i32
      %351 = arith.maxsi %350, %c0_i32_224 : i32
      %c31_i32_225 = arith.constant 31 : i32
      %352 = arith.minsi %351, %c31_i32_225 : i32
      %c8_i32_226 = arith.constant 8 : i32
      %353 = arith.muli %240, %c8_i32_226 : i32
      %c7_i32_227 = arith.constant 7 : i32
      %354 = arith.addi %353, %c7_i32_227 : i32
      %c8_i32_228 = arith.constant 8 : i32
      %355 = arith.muli %240, %c8_i32_228 : i32
      %c7_i32_229 = arith.constant 7 : i32
      %356 = arith.addi %355, %c7_i32_229 : i32
      %c0_i32_230 = arith.constant 0 : i32
      %357 = tpu.memref_slice %arg3[%352, %c0_i32_230] : memref<32x32xf32, #tpu.memory_space<vmem>> -> memref<1x32xf32, #tpu.memory_space<vmem>>
      %c0_i32_231 = arith.constant 0 : i32
      %358 = tpu.memref_slice %arg8[%354, %c0_i32_231] : memref<16x32xf32, #tpu.memory_space<vmem>> -> memref<1x32xf32, #tpu.memory_space<vmem>>
      %359 = tpu.memref_slice %arg9[%356] : memref<16x!tpu.dma_semaphore, #tpu.memory_space<semaphore_mem>> -> memref<1x!tpu.dma_semaphore, #tpu.memory_space<semaphore_mem>>
      %360 = tpu.memref_squeeze %359 : memref<1x!tpu.dma_semaphore, #tpu.memory_space<semaphore_mem>> -> memref<!tpu.dma_semaphore, #tpu.memory_space<semaphore_mem>>
      tpu.enqueue_dma source(%357 : memref<1x32xf32, #tpu.memory_space<vmem>>) target(%358 : memref<1x32xf32, #tpu.memory_space<vmem>>) target_semaphore(%360 : memref<!tpu.dma_semaphore, #tpu.memory_space<semaphore_mem>>)
    } else {
    }
    %c8_i32_58 = arith.constant 8 : i32
    %84 = arith.muli %78, %c8_i32_58 : i32
    %c0_i32_59 = arith.constant 0 : i32
    %85 = arith.addi %84, %c0_i32_59 : i32
    %86 = arith.addi %2, %85 : i32
    %87 = arith.index_cast %86 : i32 to index
    %88 = memref.load %arg2[%87] : memref<16xi32, #tpu.memory_space<smem>>
    %c0_i32_60 = arith.constant 0 : i32
    %89 = arith.maxsi %88, %c0_i32_60 : i32
    %c31_i32_61 = arith.constant 31 : i32
    %90 = arith.minsi %89, %c31_i32_61 : i32
    %c8_i32_62 = arith.constant 8 : i32
    %91 = arith.muli %79, %c8_i32_62 : i32
    %c0_i32_63 = arith.constant 0 : i32
    %92 = arith.addi %91, %c0_i32_63 : i32
    %c8_i32_64 = arith.constant 8 : i32
    %93 = arith.muli %79, %c8_i32_64 : i32
    %c0_i32_65 = arith.constant 0 : i32
    %94 = arith.addi %93, %c0_i32_65 : i32
    %c0_i32_66 = arith.constant 0 : i32
    %95 = tpu.memref_slice %arg3[%90, %c0_i32_66] : memref<32x32xf32, #tpu.memory_space<vmem>> -> memref<1x32xf32, #tpu.memory_space<vmem>>
    %c0_i32_67 = arith.constant 0 : i32
    %96 = tpu.memref_slice %arg8[%92, %c0_i32_67] : memref<16x32xf32, #tpu.memory_space<vmem>> -> memref<1x32xf32, #tpu.memory_space<vmem>>
    %97 = tpu.memref_slice %arg9[%94] : memref<16x!tpu.dma_semaphore, #tpu.memory_space<semaphore_mem>> -> memref<1x!tpu.dma_semaphore, #tpu.memory_space<semaphore_mem>>
    %98 = tpu.memref_squeeze %97 : memref<1x!tpu.dma_semaphore, #tpu.memory_space<semaphore_mem>> -> memref<!tpu.dma_semaphore, #tpu.memory_space<semaphore_mem>>
    tpu.wait_dma2 semaphore(%98 : memref<!tpu.dma_semaphore, #tpu.memory_space<semaphore_mem>>) src(%95 : memref<1x32xf32, #tpu.memory_space<vmem>>) dst(%96 : memref<1x32xf32, #tpu.memory_space<vmem>>)
    %c8_i32_68 = arith.constant 8 : i32
    %99 = arith.muli %78, %c8_i32_68 : i32
    %c1_i32_69 = arith.constant 1 : i32
    %100 = arith.addi %99, %c1_i32_69 : i32
    %101 = arith.addi %2, %100 : i32
    %102 = arith.index_cast %101 : i32 to index
    %103 = memref.load %arg2[%102] : memref<16xi32, #tpu.memory_space<smem>>
    %c0_i32_70 = arith.constant 0 : i32
    %104 = arith.maxsi %103, %c0_i32_70 : i32
    %c31_i32_71 = arith.constant 31 : i32
    %105 = arith.minsi %104, %c31_i32_71 : i32
    %c8_i32_72 = arith.constant 8 : i32
    %106 = arith.muli %79, %c8_i32_72 : i32
    %c1_i32_73 = arith.constant 1 : i32
    %107 = arith.addi %106, %c1_i32_73 : i32
    %c8_i32_74 = arith.constant 8 : i32
    %108 = arith.muli %79, %c8_i32_74 : i32
    %c1_i32_75 = arith.constant 1 : i32
    %109 = arith.addi %108, %c1_i32_75 : i32
    %c0_i32_76 = arith.constant 0 : i32
    %110 = tpu.memref_slice %arg3[%105, %c0_i32_76] : memref<32x32xf32, #tpu.memory_space<vmem>> -> memref<1x32xf32, #tpu.memory_space<vmem>>
    %c0_i32_77 = arith.constant 0 : i32
    %111 = tpu.memref_slice %arg8[%107, %c0_i32_77] : memref<16x32xf32, #tpu.memory_space<vmem>> -> memref<1x32xf32, #tpu.memory_space<vmem>>
    %112 = tpu.memref_slice %arg9[%109] : memref<16x!tpu.dma_semaphore, #tpu.memory_space<semaphore_mem>> -> memref<1x!tpu.dma_semaphore, #tpu.memory_space<semaphore_mem>>
    %113 = tpu.memref_squeeze %112 : memref<1x!tpu.dma_semaphore, #tpu.memory_space<semaphore_mem>> -> memref<!tpu.dma_semaphore, #tpu.memory_space<semaphore_mem>>
    tpu.wait_dma2 semaphore(%113 : memref<!tpu.dma_semaphore, #tpu.memory_space<semaphore_mem>>) src(%110 : memref<1x32xf32, #tpu.memory_space<vmem>>) dst(%111 : memref<1x32xf32, #tpu.memory_space<vmem>>)
    %c8_i32_78 = arith.constant 8 : i32
    %114 = arith.muli %78, %c8_i32_78 : i32
    %c2_i32_79 = arith.constant 2 : i32
    %115 = arith.addi %114, %c2_i32_79 : i32
    %116 = arith.addi %2, %115 : i32
    %117 = arith.index_cast %116 : i32 to index
    %118 = memref.load %arg2[%117] : memref<16xi32, #tpu.memory_space<smem>>
    %c0_i32_80 = arith.constant 0 : i32
    %119 = arith.maxsi %118, %c0_i32_80 : i32
    %c31_i32_81 = arith.constant 31 : i32
    %120 = arith.minsi %119, %c31_i32_81 : i32
    %c8_i32_82 = arith.constant 8 : i32
    %121 = arith.muli %79, %c8_i32_82 : i32
    %c2_i32_83 = arith.constant 2 : i32
    %122 = arith.addi %121, %c2_i32_83 : i32
    %c8_i32_84 = arith.constant 8 : i32
    %123 = arith.muli %79, %c8_i32_84 : i32
    %c2_i32_85 = arith.constant 2 : i32
    %124 = arith.addi %123, %c2_i32_85 : i32
    %c0_i32_86 = arith.constant 0 : i32
    %125 = tpu.memref_slice %arg3[%120, %c0_i32_86] : memref<32x32xf32, #tpu.memory_space<vmem>> -> memref<1x32xf32, #tpu.memory_space<vmem>>
    %c0_i32_87 = arith.constant 0 : i32
    %126 = tpu.memref_slice %arg8[%122, %c0_i32_87] : memref<16x32xf32, #tpu.memory_space<vmem>> -> memref<1x32xf32, #tpu.memory_space<vmem>>
    %127 = tpu.memref_slice %arg9[%124] : memref<16x!tpu.dma_semaphore, #tpu.memory_space<semaphore_mem>> -> memref<1x!tpu.dma_semaphore, #tpu.memory_space<semaphore_mem>>
    %128 = tpu.memref_squeeze %127 : memref<1x!tpu.dma_semaphore, #tpu.memory_space<semaphore_mem>> -> memref<!tpu.dma_semaphore, #tpu.memory_space<semaphore_mem>>
    tpu.wait_dma2 semaphore(%128 : memref<!tpu.dma_semaphore, #tpu.memory_space<semaphore_mem>>) src(%125 : memref<1x32xf32, #tpu.memory_space<vmem>>) dst(%126 : memref<1x32xf32, #tpu.memory_space<vmem>>)
    %c8_i32_88 = arith.constant 8 : i32
    %129 = arith.muli %78, %c8_i32_88 : i32
    %c3_i32_89 = arith.constant 3 : i32
    %130 = arith.addi %129, %c3_i32_89 : i32
    %131 = arith.addi %2, %130 : i32
    %132 = arith.index_cast %131 : i32 to index
    %133 = memref.load %arg2[%132] : memref<16xi32, #tpu.memory_space<smem>>
    %c0_i32_90 = arith.constant 0 : i32
    %134 = arith.maxsi %133, %c0_i32_90 : i32
    %c31_i32_91 = arith.constant 31 : i32
    %135 = arith.minsi %134, %c31_i32_91 : i32
    %c8_i32_92 = arith.constant 8 : i32
    %136 = arith.muli %79, %c8_i32_92 : i32
    %c3_i32_93 = arith.constant 3 : i32
    %137 = arith.addi %136, %c3_i32_93 : i32
    %c8_i32_94 = arith.constant 8 : i32
    %138 = arith.muli %79, %c8_i32_94 : i32
    %c3_i32_95 = arith.constant 3 : i32
    %139 = arith.addi %138, %c3_i32_95 : i32
    %c0_i32_96 = arith.constant 0 : i32
    %140 = tpu.memref_slice %arg3[%135, %c0_i32_96] : memref<32x32xf32, #tpu.memory_space<vmem>> -> memref<1x32xf32, #tpu.memory_space<vmem>>
    %c0_i32_97 = arith.constant 0 : i32
    %141 = tpu.memref_slice %arg8[%137, %c0_i32_97] : memref<16x32xf32, #tpu.memory_space<vmem>> -> memref<1x32xf32, #tpu.memory_space<vmem>>
    %142 = tpu.memref_slice %arg9[%139] : memref<16x!tpu.dma_semaphore, #tpu.memory_space<semaphore_mem>> -> memref<1x!tpu.dma_semaphore, #tpu.memory_space<semaphore_mem>>
    %143 = tpu.memref_squeeze %142 : memref<1x!tpu.dma_semaphore, #tpu.memory_space<semaphore_mem>> -> memref<!tpu.dma_semaphore, #tpu.memory_space<semaphore_mem>>
    tpu.wait_dma2 semaphore(%143 : memref<!tpu.dma_semaphore, #tpu.memory_space<semaphore_mem>>) src(%140 : memref<1x32xf32, #tpu.memory_space<vmem>>) dst(%141 : memref<1x32xf32, #tpu.memory_space<vmem>>)
    %c8_i32_98 = arith.constant 8 : i32
    %144 = arith.muli %78, %c8_i32_98 : i32
    %c4_i32_99 = arith.constant 4 : i32
    %145 = arith.addi %144, %c4_i32_99 : i32
    %146 = arith.addi %2, %145 : i32
    %147 = arith.index_cast %146 : i32 to index
    %148 = memref.load %arg2[%147] : memref<16xi32, #tpu.memory_space<smem>>
    %c0_i32_100 = arith.constant 0 : i32
    %149 = arith.maxsi %148, %c0_i32_100 : i32
    %c31_i32_101 = arith.constant 31 : i32
    %150 = arith.minsi %149, %c31_i32_101 : i32
    %c8_i32_102 = arith.constant 8 : i32
    %151 = arith.muli %79, %c8_i32_102 : i32
    %c4_i32_103 = arith.constant 4 : i32
    %152 = arith.addi %151, %c4_i32_103 : i32
    %c8_i32_104 = arith.constant 8 : i32
    %153 = arith.muli %79, %c8_i32_104 : i32
    %c4_i32_105 = arith.constant 4 : i32
    %154 = arith.addi %153, %c4_i32_105 : i32
    %c0_i32_106 = arith.constant 0 : i32
    %155 = tpu.memref_slice %arg3[%150, %c0_i32_106] : memref<32x32xf32, #tpu.memory_space<vmem>> -> memref<1x32xf32, #tpu.memory_space<vmem>>
    %c0_i32_107 = arith.constant 0 : i32
    %156 = tpu.memref_slice %arg8[%152, %c0_i32_107] : memref<16x32xf32, #tpu.memory_space<vmem>> -> memref<1x32xf32, #tpu.memory_space<vmem>>
    %157 = tpu.memref_slice %arg9[%154] : memref<16x!tpu.dma_semaphore, #tpu.memory_space<semaphore_mem>> -> memref<1x!tpu.dma_semaphore, #tpu.memory_space<semaphore_mem>>
    %158 = tpu.memref_squeeze %157 : memref<1x!tpu.dma_semaphore, #tpu.memory_space<semaphore_mem>> -> memref<!tpu.dma_semaphore, #tpu.memory_space<semaphore_mem>>
    tpu.wait_dma2 semaphore(%158 : memref<!tpu.dma_semaphore, #tpu.memory_space<semaphore_mem>>) src(%155 : memref<1x32xf32, #tpu.memory_space<vmem>>) dst(%156 : memref<1x32xf32, #tpu.memory_space<vmem>>)
    %c8_i32_108 = arith.constant 8 : i32
    %159 = arith.muli %78, %c8_i32_108 : i32
    %c5_i32_109 = arith.constant 5 : i32
    %160 = arith.addi %159, %c5_i32_109 : i32
    %161 = arith.addi %2, %160 : i32
    %162 = arith.index_cast %161 : i32 to index
    %163 = memref.load %arg2[%162] : memref<16xi32, #tpu.memory_space<smem>>
    %c0_i32_110 = arith.constant 0 : i32
    %164 = arith.maxsi %163, %c0_i32_110 : i32
    %c31_i32_111 = arith.constant 31 : i32
    %165 = arith.minsi %164, %c31_i32_111 : i32
    %c8_i32_112 = arith.constant 8 : i32
    %166 = arith.muli %79, %c8_i32_112 : i32
    %c5_i32_113 = arith.constant 5 : i32
    %167 = arith.addi %166, %c5_i32_113 : i32
    %c8_i32_114 = arith.constant 8 : i32
    %168 = arith.muli %79, %c8_i32_114 : i32
    %c5_i32_115 = arith.constant 5 : i32
    %169 = arith.addi %168, %c5_i32_115 : i32
    %c0_i32_116 = arith.constant 0 : i32
    %170 = tpu.memref_slice %arg3[%165, %c0_i32_116] : memref<32x32xf32, #tpu.memory_space<vmem>> -> memref<1x32xf32, #tpu.memory_space<vmem>>
    %c0_i32_117 = arith.constant 0 : i32
    %171 = tpu.memref_slice %arg8[%167, %c0_i32_117] : memref<16x32xf32, #tpu.memory_space<vmem>> -> memref<1x32xf32, #tpu.memory_space<vmem>>
    %172 = tpu.memref_slice %arg9[%169] : memref<16x!tpu.dma_semaphore, #tpu.memory_space<semaphore_mem>> -> memref<1x!tpu.dma_semaphore, #tpu.memory_space<semaphore_mem>>
    %173 = tpu.memref_squeeze %172 : memref<1x!tpu.dma_semaphore, #tpu.memory_space<semaphore_mem>> -> memref<!tpu.dma_semaphore, #tpu.memory_space<semaphore_mem>>
    tpu.wait_dma2 semaphore(%173 : memref<!tpu.dma_semaphore, #tpu.memory_space<semaphore_mem>>) src(%170 : memref<1x32xf32, #tpu.memory_space<vmem>>) dst(%171 : memref<1x32xf32, #tpu.memory_space<vmem>>)
    %c8_i32_118 = arith.constant 8 : i32
    %174 = arith.muli %78, %c8_i32_118 : i32
    %c6_i32_119 = arith.constant 6 : i32
    %175 = arith.addi %174, %c6_i32_119 : i32
    %176 = arith.addi %2, %175 : i32
    %177 = arith.index_cast %176 : i32 to index
    %178 = memref.load %arg2[%177] : memref<16xi32, #tpu.memory_space<smem>>
    %c0_i32_120 = arith.constant 0 : i32
    %179 = arith.maxsi %178, %c0_i32_120 : i32
    %c31_i32_121 = arith.constant 31 : i32
    %180 = arith.minsi %179, %c31_i32_121 : i32
    %c8_i32_122 = arith.constant 8 : i32
    %181 = arith.muli %79, %c8_i32_122 : i32
    %c6_i32_123 = arith.constant 6 : i32
    %182 = arith.addi %181, %c6_i32_123 : i32
    %c8_i32_124 = arith.constant 8 : i32
    %183 = arith.muli %79, %c8_i32_124 : i32
    %c6_i32_125 = arith.constant 6 : i32
    %184 = arith.addi %183, %c6_i32_125 : i32
    %c0_i32_126 = arith.constant 0 : i32
    %185 = tpu.memref_slice %arg3[%180, %c0_i32_126] : memref<32x32xf32, #tpu.memory_space<vmem>> -> memref<1x32xf32, #tpu.memory_space<vmem>>
    %c0_i32_127 = arith.constant 0 : i32
    %186 = tpu.memref_slice %arg8[%182, %c0_i32_127] : memref<16x32xf32, #tpu.memory_space<vmem>> -> memref<1x32xf32, #tpu.memory_space<vmem>>
    %187 = tpu.memref_slice %arg9[%184] : memref<16x!tpu.dma_semaphore, #tpu.memory_space<semaphore_mem>> -> memref<1x!tpu.dma_semaphore, #tpu.memory_space<semaphore_mem>>
    %188 = tpu.memref_squeeze %187 : memref<1x!tpu.dma_semaphore, #tpu.memory_space<semaphore_mem>> -> memref<!tpu.dma_semaphore, #tpu.memory_space<semaphore_mem>>
    tpu.wait_dma2 semaphore(%188 : memref<!tpu.dma_semaphore, #tpu.memory_space<semaphore_mem>>) src(%185 : memref<1x32xf32, #tpu.memory_space<vmem>>) dst(%186 : memref<1x32xf32, #tpu.memory_space<vmem>>)
    %c8_i32_128 = arith.constant 8 : i32
    %189 = arith.muli %78, %c8_i32_128 : i32
    %c7_i32_129 = arith.constant 7 : i32
    %190 = arith.addi %189, %c7_i32_129 : i32
    %191 = arith.addi %2, %190 : i32
    %192 = arith.index_cast %191 : i32 to index
    %193 = memref.load %arg2[%192] : memref<16xi32, #tpu.memory_space<smem>>
    %c0_i32_130 = arith.constant 0 : i32
    %194 = arith.maxsi %193, %c0_i32_130 : i32
    %c31_i32_131 = arith.constant 31 : i32
    %195 = arith.minsi %194, %c31_i32_131 : i32
    %c8_i32_132 = arith.constant 8 : i32
    %196 = arith.muli %79, %c8_i32_132 : i32
    %c7_i32_133 = arith.constant 7 : i32
    %197 = arith.addi %196, %c7_i32_133 : i32
    %c8_i32_134 = arith.constant 8 : i32
    %198 = arith.muli %79, %c8_i32_134 : i32
    %c7_i32_135 = arith.constant 7 : i32
    %199 = arith.addi %198, %c7_i32_135 : i32
    %c0_i32_136 = arith.constant 0 : i32
    %200 = tpu.memref_slice %arg3[%195, %c0_i32_136] : memref<32x32xf32, #tpu.memory_space<vmem>> -> memref<1x32xf32, #tpu.memory_space<vmem>>
    %c0_i32_137 = arith.constant 0 : i32
    %201 = tpu.memref_slice %arg8[%197, %c0_i32_137] : memref<16x32xf32, #tpu.memory_space<vmem>> -> memref<1x32xf32, #tpu.memory_space<vmem>>
    %202 = tpu.memref_slice %arg9[%199] : memref<16x!tpu.dma_semaphore, #tpu.memory_space<semaphore_mem>> -> memref<1x!tpu.dma_semaphore, #tpu.memory_space<semaphore_mem>>
    %203 = tpu.memref_squeeze %202 : memref<1x!tpu.dma_semaphore, #tpu.memory_space<semaphore_mem>> -> memref<!tpu.dma_semaphore, #tpu.memory_space<semaphore_mem>>
    tpu.wait_dma2 semaphore(%203 : memref<!tpu.dma_semaphore, #tpu.memory_space<semaphore_mem>>) src(%200 : memref<1x32xf32, #tpu.memory_space<vmem>>) dst(%201 : memref<1x32xf32, #tpu.memory_space<vmem>>)
    %c8_i32_138 = arith.constant 8 : i32
    %204 = arith.muli %79, %c8_i32_138 : i32
    %205 = tpu.assume_multiple %204, 8 : i32
    %206 = arith.index_cast %205 : i32 to index
    %c0_139 = arith.constant 0 : index
    %207 = vector.load %arg8[%206, %c0_139] : memref<16x32xf32, #tpu.memory_space<vmem>>, vector<8x32xf32>
    %c8_i32_140 = arith.constant 8 : i32
    %208 = arith.muli %78, %c8_i32_140 : i32
    %209 = tpu.assume_multiple %208, 8 : i32
    %cst = arith.constant 5.65685415 : f32
    %210 = vector.broadcast %cst : f32 to vector<8x32xf32>
    %211 = arith.mulf %207, %210 : vector<8x32xf32>
    %212 = arith.index_cast %209 : i32 to index
    %c0_141 = arith.constant 0 : index
    %213 = vector.load %arg4[%212, %c0_141] : memref<8x32xf32, #tpu.memory_space<vmem>>, vector<8x32xf32>
    %214 = arith.addf %211, %213 : vector<8x32xf32>
    %cst_142 = arith.constant dense<0.000000e+00> : vector<8xf32>
    %215 = vector.multi_reduction <add>, %214, %cst_142 [1] : vector<8x32xf32> to vector<8xf32>
    %216 = vector.shape_cast %215 : vector<8xf32> to vector<8x1xf32>
    %cst_143 = arith.constant 3.125000e-02 : f32
    %217 = vector.broadcast %cst_143 : f32 to vector<8x1xf32>
    %218 = arith.mulf %216, %217 : vector<8x1xf32>
    %219 = vector.broadcast %218 : vector<8x1xf32> to vector<8x32xf32>
    %220 = arith.subf %214, %219 : vector<8x32xf32>
    %221 = arith.mulf %220, %220 : vector<8x32xf32>
    %cst_144 = arith.constant dense<0.000000e+00> : vector<8xf32>
    %222 = vector.multi_reduction <add>, %221, %cst_144 [1] : vector<8x32xf32> to vector<8xf32>
    %223 = vector.shape_cast %222 : vector<8xf32> to vector<8x1xf32>
    %cst_145 = arith.constant 3.125000e-02 : f32
    %224 = vector.broadcast %cst_145 : f32 to vector<8x1xf32>
    %225 = arith.mulf %223, %224 : vector<8x1xf32>
    %cst_146 = arith.constant 9.99999974E-6 : f32
    %226 = vector.broadcast %cst_146 : f32 to vector<8x1xf32>
    %227 = arith.addf %225, %226 : vector<8x1xf32>
    %228 = math.rsqrt %227 : vector<8x1xf32>
    %229 = vector.broadcast %228 : vector<8x1xf32> to vector<8x32xf32>
    %230 = arith.mulf %220, %229 : vector<8x32xf32>
    %231 = vector.broadcast %3 : vector<1x32xf32> to vector<8x32xf32>
    %232 = arith.mulf %230, %231 : vector<8x32xf32>
    %233 = vector.broadcast %4 : vector<1x32xf32> to vector<8x32xf32>
    %234 = arith.addf %232, %233 : vector<8x32xf32>
    %c0_147 = arith.constant 0 : index
    %235 = arith.index_cast %209 : i32 to index
    %c0_148 = arith.constant 0 : index
    %236 = vector.load %arg7[%c0_147, %235, %c0_148] : memref<1x8x32xf32, #tpu.memory_space<vmem>>, vector<1x8x32xf32>
    %237 = vector.shape_cast %236 : vector<1x8x32xf32> to vector<8x32xf32>
    %238 = vector.shape_cast %234 : vector<8x32xf32> to vector<1x8x32xf32>
    tpu.vector_store %arg7[%c0_147, %235, %c0_148], %238 {strides = array<i32>} : memref<1x8x32xf32, #tpu.memory_space<vmem>>, vector<1x8x32xf32>,
    %c1_i32_149 = arith.constant 1 : i32
    return
  }
  func.func @transform_0(%arg0: i32, %arg1: i32, %arg2: memref<16xi32, #tpu.memory_space<smem>>) -> (i32, i32) {
    %c0_i32 = arith.constant 0 : i32
    %c0_i32_0 = arith.constant 0 : i32
    %c0_i32_1 = arith.constant 0 : i32
    return %c0_i32, %c0_i32_0 : i32, i32
  }
  func.func @transform_1(%arg0: i32, %arg1: i32, %arg2: memref<16xi32, #tpu.memory_space<smem>>) -> (i32, i32) {
    %c0_i32 = arith.constant 0 : i32
    %c0_i32_0 = arith.constant 0 : i32
    return %arg0, %c0_i32 : i32, i32
  }
  func.func @transform_2(%arg0: i32, %arg1: i32, %arg2: memref<16xi32, #tpu.memory_space<smem>>) -> (i32, i32) {
    %c0_i32 = arith.constant 0 : i32
    %c0_i32_0 = arith.constant 0 : i32
    %c0_i32_1 = arith.constant 0 : i32
    return %c0_i32, %c0_i32_0 : i32, i32
  }
  func.func @transform_3(%arg0: i32, %arg1: i32, %arg2: memref<16xi32, #tpu.memory_space<smem>>) -> (i32, i32) {
    %c0_i32 = arith.constant 0 : i32
    %c0_i32_0 = arith.constant 0 : i32
    %c0_i32_1 = arith.constant 0 : i32
    return %c0_i32, %c0_i32_0 : i32, i32
  }
  func.func @transform_4(%arg0: i32, %arg1: i32, %arg2: memref<16xi32, #tpu.memory_space<smem>>) -> (i32, i32, i32) {
    %c0_i32 = arith.constant 0 : i32
    %c0_i32_0 = arith.constant 0 : i32
    return %arg1, %arg0, %c0_i32 : i32, i32, i32
  }
}

</mosaic_0001>

<bundles_post_ra>
// kernel: tpu_custom_call.1
= control target key start
LH: loop header
LB: loop body
LE: loop exit
PB: predicated region body
PF: predicated region fallthrough
CT: control target
= control target key end

     0   :  { %s1238_s21 = smov [#allocation5]   ;;  %s1433_s0 = inlined_call_operand.hbm [shape: s32[16], index: 0, kind: input, shape index: {}]   ;;  %s1434_s1 = inlined_call_operand.hbm [shape: f32[32,32], index: 1, kind: input, shape index: {}]   ;;  %s1435_s2 = inlined_call_operand.hbm [shape: f32[8,32], index: 2, kind: input, shape index: {}]   ;;  %s1436_s3 = inlined_call_operand.vmem [shape: f32[1,32], index: 3, kind: input, shape index: {}]   ;;  %s1437_s4 = inlined_call_operand.vmem [shape: f32[1,32], index: 4, kind: input, shape index: {}]   ;;  %s1438_s5 = inlined_call_operand.hbm [shape: f32[2,8,32], index: 5, kind: output, shape index: {}]  }
   0x1   :  { %s11_s20 = sshll.u32 %s1433_s0, 4  ;;  %s12_s20 = int_to_ptr.hbm [resolvable:$true] %s11_s20 }
   0x2   :  { %14 = dma.hbm_to_smem %s12_s20, 16, %s1238_s21, [#allocation4] }
   0x3   :  { %1184 = dma.done.wait [#allocation4], 16 }
   0x4   :  { %1185 = vsyncadd [#allocation4], 4294967280 }
   0x5   :  { %17 = sfence }
   0x6   :  { %18 = vsyncpa [#allocation7], 0 }
   0x7   :  { %19 = vsyncpa [#allocation10], 0 }
   0x8   :  { %20 = vsyncpa [#allocation8], 0 }
   0x9   :  { %22 = vsyncpa [#allocation8 + $0x1], 0  ;;  %s1276_s22 = smov 0   ;;  %s1278_s23 = smov 0  }
   0xa   :  { %s1280_s24 = smov 0   ;;  %s1282_s25 = smov 0  }
   0xb   :  { %s1284_s26 = smov 0   ;;  %s1286_s0 = smov 0  }
   0xc LB: > { %s893_s27 = sadd.s32 4294967295, %s1236_s0   ;;  %s894_s28 = sadd.s32 4294967294, %s1236_s0   ;;  %s1236_s0 = sphi %s1286_s0, %s28_s0   ;;  %s1232_s26 = sphi %s1284_s26, %s1447_s26   ;;  %s1228_s25 = sphi %s1282_s25, %s1446_s25   ;;  %s1224_s24 = sphi %s1280_s24, %s1445_s24   ;;  %s1220_s23 = sphi %s1278_s23, %s1444_s23   ;;  %s1216_s22 = sphi %s1276_s22, %s1443_s22  }
   0xd   : > { %s37_s29 = sadd.s32 1, %s1232_s26  ;;  %s138_s30 = sadd.s32 1, %s1224_s24 }
   0xe   : > { %p38_p0 = scmp.ge.s32.totalorder %s37_s29, 2  ;;  %p148_p1 = scmp.ne.s32.totalorder %s1224_s24, %s1220_s23 }
   0xf   : > { %p149_p2 = scmp.eq.s32.totalorder %s893_s27, 1  ;;  %p154_p3 = scmp.ne.s32.totalorder %s1220_s23, %s1216_s22 }
  0x10   : > { %s1449_s29 = smov (%p38_p0, %s37_s29), 0  ;;  %p155_p5 = scmp.eq.s32.totalorder %s894_s28, 1 }
  0x11   : > { %p1316_p4 = por %p149_p2, %p148_p1  ;;  %s133_s7 = ssub.s32 %s1232_s26, %s1449_s29 }
  0x12   : > { %p895_p6 = scmp.ge.s32.totalorder %s1236_s0, 1  ;;  %p136_p7 = scmp.eq.s32.totalorder %s133_s7, 0 }
  0x13   : > { %p1323_p8 = por %p155_p5, %p154_p3  ;;  %p162_p9 = scmp.lt.s32.totalorder %s1236_s0, 3 }
  0x14   : > { %s1329_s9 = scalar_select %p136_p7, %s1224_s24, %s138_s30  }
  0x15   : > { %p1331_p10 = pnand %p895_p6, %p162_p9  ;;  %p1335_p11 = scmp.eq.s32.totalorder %s893_s27, 0 }
  0x16   : > { %s173_s14 = sshll.u32 %s1434_s1, 4  ;;  %s1239_s15 = smov [#allocation6]   ;;  %s174_s14 = int_to_ptr.hbm [resolvable:$true] %s173_s14 }
  0x17   : > { %p989_p12 = pneg %p1331_p10  ;;  %s175_s16 = sshll.u32 %s1239_s15, 4  ;;  %s176_s16 = int_to_ptr.vmem [resolvable:$true] %s175_s16 }
  0x18   : > { %s190_s19 = sshll.u32 %s1435_s2, 4  ;;  %s1240_s20 = smov 128   ;;  %s191_s19 = int_to_ptr.hbm [resolvable:$true] %s190_s19 }
  0x19   : > { %p990_p13 = pnand %p1335_p11, %p989_p12  ;;  %s1241_s21 = smov 8  }
  0x1a   : > { %s1242_s27 = smov [#allocation9]   ;;  %211 = sbr.rel (%p1331_p10) target bundleno = 438 (0x1b6), region = 36 }
  0x1b   : > { %992 = dma.hbm_to_vmem [thread:$0]  (!%p990_p13), %s174_s14, 512, %s176_s16, [#allocation7], %s1240_s20, %s1240_s20, %s1241_s21  }
  0x1c   : > { %s192_s28 = sshll.u32 %s1242_s27, 4  ;;  %s193_s28 = int_to_ptr.vmem [resolvable:$true] %s192_s28 }
  0x1d   : > { %995 = dma.hbm_to_vmem [thread:$0]  (!%p990_p13), %s191_s19, 128, %s193_s28, [#allocation10]  }
  0x1f   : > { %1187 = dma.done.wait (%p1335_p11), [#allocation7], 512  }
  0x20   : > { %1189 = vsyncadd (%p1335_p11), [#allocation7], 4294966784 }
  0x21   : > { %1191 = dma.done.wait (%p1335_p11), [#allocation10], 128  }
  0x22   : > { %1193 = vsyncadd (%p1335_p11), [#allocation10], 4294967168  ;;  %s1360_s30 = sshll.u32 %s1228_s25, 3  ;;  %s235_s7 = sand.u32 1, %s1220_s23   ;;  %v1371_v0 = vld [vmem:[%s1436_s3] sm:$0x1] }
  0x23   : > { %s243_s10 = sld [smem:[#allocation5 + %s1360_s30]]  ;;  %s1366_s12 = sshll.u32 %s235_s7, 3  ;;  %v1376_v1 = vld [vmem:[%s1437_s4] sm:$0x1] }
  0x24   : > { %s237_s16 = scalar_lea.vmem [#allocation11], %s1366_s12 }
  0x29   : > { %p244_p0 = scmp.gt.s32.totalorder %s243_s10, 0  ;;  %p903_p1 = scmp.lt.s32.totalorder %s243_s10, 31 }
  0x2b   : > { %s1451_s10 = smov (!%p244_p0, %s243_s10), 0 }
  0x2c   : > { %s1453_s10 = smov (!%p903_p1, %s1451_s10), 31 }
  0x2d   : > { %s248_s25 = scalar_lea.vmem [#allocation6], %s1453_s10 }
  0x2e   : > { %v263_v2 = vld [vmem:[%s248_s25] sm:$0x1] }
  0x2f   : > { %264 = vst [vmem:[#allocation2] sm:$0x1] %v263_v2 }
  0x30   : > { %282 = vsyncadd [#allocation3], 16  ;;  %s283_s17 = sadd.s32 1, %s1360_s30 }
  0x31   : > { %s284_s18 = sld [smem:[#allocation5 + %s283_s17]] }
  0x37   : > { %p285_p2 = scmp.gt.s32.totalorder %s284_s18, 0  ;;  %p908_p3 = scmp.lt.s32.totalorder %s284_s18, 31 }
  0x39   : > { %s1455_s18 = smov (!%p285_p2, %s284_s18), 0 }
  0x3a   : > { %s1457_s18 = smov (!%p908_p3, %s1455_s18), 31 }
  0x3b   : > { %s289_s19 = scalar_lea.vmem [#allocation6], %s1457_s18 }
  0x3c   : > { %v306_v3 = vld [vmem:[%s289_s19] sm:$0x1] }
  0x3d   : > { %307 = vst [vmem:[#allocation2 + $0x1] sm:$0x1] %v306_v3 }
  0x3e   : > { %325 = vsyncadd [#allocation3 + $0x1], 16  ;;  %s326_s20 = sadd.s32 2, %s1360_s30 }
  0x3f   : > { %s327_s21 = sld [smem:[#allocation5 + %s326_s20]] }
  0x45   : > { %p328_p5 = scmp.gt.s32.totalorder %s327_s21, 0  ;;  %p913_p6 = scmp.lt.s32.totalorder %s327_s21, 31 }
  0x47   : > { %s1459_s21 = smov (!%p328_p5, %s327_s21), 0 }
  0x48   : > { %s1461_s21 = smov (!%p913_p6, %s1459_s21), 31 }
  0x49   : > { %s332_s27 = scalar_lea.vmem [#allocation6], %s1461_s21 }
  0x4a   : > { %v349_v4 = vld [vmem:[%s332_s27] sm:$0x1] }
  0x4b   : > { %350 = vst [vmem:[#allocation2 + $0x2] sm:$0x1] %v349_v4 }
  0x4c   : > { %368 = vsyncadd [#allocation3 + $0x2], 16  ;;  %s369_s28 = sadd.s32 3, %s1360_s30 }
  0x4d   : > { %s370_s10 = sld [smem:[#allocation5 + %s369_s28]] }
  0x53   : > { %p371_p7 = scmp.gt.s32.totalorder %s370_s10, 0  ;;  %p918_p9 = scmp.lt.s32.totalorder %s370_s10, 31 }
  0x55   : > { %s1463_s10 = smov (!%p371_p7, %s370_s10), 0 }
  0x56   : > { %s1465_s10 = smov (!%p918_p9, %s1463_s10), 31 }
  0x57   : > { %s375_s13 = scalar_lea.vmem [#allocation6], %s1465_s10 }
  0x58   : > { %v392_v5 = vld [vmem:[%s375_s13] sm:$0x1] }
  0x59   : > { %393 = vst [vmem:[#allocation2 + $0x3] sm:$0x1] %v392_v5 }
  0x5a   : > { %411 = vsyncadd [#allocation3 + $0x3], 16  ;;  %s412_s14 = sadd.s32 4, %s1360_s30 }
  0x5b   : > { %s413_s15 = sld [smem:[#allocation5 + %s412_s14]] }
  0x61   : > { %p414_p10 = scmp.gt.s32.totalorder %s413_s15, 0  ;;  %p923_p11 = scmp.lt.s32.totalorder %s413_s15, 31 }
  0x63   : > { %s1467_s15 = smov (!%p414_p10, %s413_s15), 0 }
  0x64   : > { %s1469_s15 = smov (!%p923_p11, %s1467_s15), 31 }
  0x65   : > { %s418_s11 = scalar_lea.vmem [#allocation6], %s1469_s15 }
  0x66   : > { %v435_v6 = vld [vmem:[%s418_s11] sm:$0x1] }
  0x67   : > { %436 = vst [vmem:[#allocation2 + $0x4] sm:$0x1] %v435_v6 }
  0x68   : > { %454 = vsyncadd [#allocation3 + $0x4], 16  ;;  %s455_s25 = sadd.s32 5, %s1360_s30 }
  0x69   : > { %s456_s17 = sld [smem:[#allocation5 + %s455_s25]] }
  0x6f   : > { %p457_p12 = scmp.gt.s32.totalorder %s456_s17, 0  ;;  %p928_p13 = scmp.lt.s32.totalorder %s456_s17, 31 }
  0x71   : > { %s1471_s17 = smov (!%p457_p12, %s456_s17), 0 }
  0x72   : > { %s1473_s17 = smov (!%p928_p13, %s1471_s17), 31 }
  0x73   : > { %s461_s18 = scalar_lea.vmem [#allocation6], %s1473_s17 }
  0x74   : > { %v478_v7 = vld [vmem:[%s461_s18] sm:$0x1] }
  0x75   : > { %479 = vst [vmem:[#allocation2 + $0x5] sm:$0x1] %v478_v7 }
  0x76   : > { %497 = vsyncadd [#allocation3 + $0x5], 16  ;;  %s498_s19 = sadd.s32 6, %s1360_s30 }
  0x77   : > { %s499_s20 = sld [smem:[#allocation5 + %s498_s19]] }
  0x7d   : > { %p500_p0 = scmp.gt.s32.totalorder %s499_s20, 0  ;;  %p933_p1 = scmp.lt.s32.totalorder %s499_s20, 31 }
  0x7f   : > { %s1475_s20 = smov (!%p500_p0, %s499_s20), 0 }
  0x80   : > { %s1477_s20 = smov (!%p933_p1, %s1475_s20), 31 }
  0x81   : > { %s504_s21 = scalar_lea.vmem [#allocation6], %s1477_s20 }
  0x82   : > { %v521_v8 = vld [vmem:[%s504_s21] sm:$0x1] }
  0x83   : > { %522 = vst [vmem:[#allocation2 + $0x6] sm:$0x1] %v521_v8 }
  0x84   : > { %540 = vsyncadd [#allocation3 + $0x6], 16  ;;  %s541_s27 = sadd.s32 7, %s1360_s30 }
  0x85   : > { %s542_s28 = sld [smem:[#allocation5 + %s541_s27]] }
  0x8b   : > { %p543_p2 = scmp.gt.s32.totalorder %s542_s28, 0  ;;  %p938_p3 = scmp.lt.s32.totalorder %s542_s28, 31 }
  0x8d   : > { %s1479_s28 = smov (!%p543_p2, %s542_s28), 0 }
  0x8e   : > { %s1481_s28 = smov (!%p938_p3, %s1479_s28), 31 }
  0x8f   : > { %s547_s10 = scalar_lea.vmem [#allocation6], %s1481_s28 }
  0x90   : > { %v564_v9 = vld [vmem:[%s547_s10] sm:$0x1] }
  0x91   : > { %565 = vst [vmem:[#allocation2 + $0x7] sm:$0x1] %v564_v9 }
  0x92   : > { %583 = vsyncadd [#allocation3 + $0x7], 16 }
  0x93   : > { %1194 = dma.done.wait [#allocation3], 16 }
  0x94   : > { %1195 = vsyncadd [#allocation3], 4294967280 }
  0x95   : > { %1196 = dma.done.wait [#allocation3 + $0x1], 16 }
  0x96   : > { %1197 = vsyncadd [#allocation3 + $0x1], 4294967280 }
  0x97   : > { %1198 = dma.done.wait [#allocation3 + $0x2], 16 }
  0x98   : > { %1199 = vsyncadd [#allocation3 + $0x2], 4294967280 }
  0x99   : > { %1200 = dma.done.wait [#allocation3 + $0x3], 16 }
  0x9a   : > { %1201 = vsyncadd [#allocation3 + $0x3], 4294967280 }
  0x9b   : > { %1202 = dma.done.wait [#allocation3 + $0x4], 16 }
  0x9c   : > { %1203 = vsyncadd [#allocation3 + $0x4], 4294967280 }
  0x9d   : > { %1204 = dma.done.wait [#allocation3 + $0x5], 16 }
  0x9e   : > { %1205 = vsyncadd [#allocation3 + $0x5], 4294967280 }
  0x9f   : > { %1206 = dma.done.wait [#allocation3 + $0x6], 16 }
  0xa0   : > { %1207 = vsyncadd [#allocation3 + $0x6], 4294967280 }
  0xa1   : > { %1208 = dma.done.wait [#allocation3 + $0x7], 16 }
  0xa2   : > { %1209 = vsyncadd [#allocation3 + $0x7], 4294967280  ;;  %v609_v10 = vld [vmem:[#allocation2] sm:$0xff]  ;;  %v611_v11 = vld [vmem:[#allocation9] sm:$0xff]  ;;  %vm613_vm0 = vcmask 261120   ;;  %v637_v29 = vperm.slane %v1371_v0, 0  ;;  %s657_s15 = scalar_lea.hbm %s1438_s5, %s1360_s30 }
  0xa3   : > { %v610_v12 = vmul.f32 5.656854, %v609_v10  ;;  %v641_v32 = vperm.slane %v1376_v1, 0  ;;  %s659_s11 = sshll.u32 %s237_s16, 4  ;;  %s661_s25 = sshll.u32 %s657_s15, 4  ;;  %s660_s11 = int_to_ptr.vmem [resolvable:$true] %s659_s11  ;;  %s662_s25 = int_to_ptr.hbm [resolvable:$true] %s661_s25 }
  0xa4   : > { %s646_s17 = scalar_lea.sflag [#allocation8], %s235_s7  ;;  %s1146_s18 = sshra.s32 %s662_s25, 4  ;;  %s1147_s18 = int_to_ptr.hbm [resolvable:$true] %s1146_s18 }
  0xa5   : > { %v612_v13 = vadd.f32 %v611_v11, %v610_v12  ;;  %s1148_s30 = scalar_lea.hbm %s1147_s18, 8  ;;  %s1152_s21 = scalar_lea.hbm %s1438_s5, 16 }
  0xa6   : > { %p1149_p5 = scmp.ne.s32.totalorder %s1147_s18, %s1148_s30  ;;  %p1153_p9 = scmp.lt.s32.totalorder %s1147_s18, %s1438_s5 }
  0xa7   : > { %v614_v14 = vsel %vm613_vm0, %v612_v13, 0.0  ;;  %p1154_p10 = scmp.lt.s32.totalorder %s1152_s21, %s1148_s30 }
  0xa8   : > { %615 = vadd.xlane.f32.xlu0 %v614_v14  ;;  %p1150_p6 = pnand %p1149_p5, %p1316_p4 }
  0xa9   : > { %p1155_p11 = por %p1154_p10, %p1153_p9 }
  0xaa   : > { %p1151_p7 = pneg %p1150_p6 }
  0xac   : > { %p1156_p12 = pnand %p1155_p11, %p1151_p7 }
 0x11b   : > { %v616_v15 = vpop.xlane.xlu0 %615 }
 0x11c   : > { %v617_v16 = vmul.f32 0.03125, %v616_v15 }
 0x11e   : > { %v618_v17 = vsub.f32 %v612_v13, %v617_v16 }
 0x120   : > { %v619_v18 = vmul.f32 %v618_v17, %v618_v17 }
 0x122   : > { %v620_v19 = vsel %vm613_vm0, %v619_v18, 0.0 }
 0x123   : > { %621 = vadd.xlane.f32.xlu0 %v620_v19 }
 0x196   : > { %v622_v20 = vpop.xlane.xlu0 %621 }
 0x197   : > { %v623_v21 = vmul.f32 0.03125, %v622_v20 }
 0x199   : > { %v624_v22 = vadd.f32 1e-05, %v623_v21 }
 0x19b   : > { %1058 = vrsqrt.f32 %v624_v22  ;;  %vm631_vm2 = vweird.f32 %v624_v22 }
 0x1a1   : > { %v1059_v23 = vpop.eup %1058 }
 0x1a2   : > { %v626_v24 = vmul.f32 %v1059_v23, %v624_v22  ;;  %vm632_vm1 = vweird.f32 %v1059_v23 }
 0x1a3   : > { %vm633_vm3 = vmor %vm631_vm2, %vm632_vm1 }
 0x1a4   : > { %v627_v25 = vmul.f32 %v1059_v23, %v626_v24 }
 0x1a6   : > { %v628_v26 = vmul.f32 0.5, %v627_v25 }
 0x1a8   : > { %v629_v27 = vsub.f32 1.5, %v628_v26 }
 0x1aa   : > { %v630_v28 = vmul.f32 %v1059_v23, %v629_v27 }
 0x1ac   : > { %v634_v30 = vsel %vm633_vm3, %v1059_v23, %v630_v28 }
 0x1ad   : > { %v635_v31 = vmul.f32 %v634_v30, %v618_v17 }
 0x1af   : > { %v639_v33 = vmul.f32 %v637_v29, %v635_v31 }
 0x1b1   : > { %v643_v34 = vadd.f32 %v641_v32, %v639_v33 }
 0x1b3   : > { %644 = vst.msk [vmem:[%s237_s16] sm:$0xff] %vm613_vm0, %v643_v34 }
 0x1b4   : > { %1159 = shalt.err (!%p1156_p12)
}
 0x1b5   : > { %987 = dma.vmem_to_hbm [thread:$0]  (%p1316_p4), %s660_s11, 128, %s662_s25, %s646_s17  }
 0x1b6 PF: > { %p1004_p13 = scmp.ge.s32.totalorder %s1236_s0, 2  ;;  %s673_s7 = sand.u32 1, %s1216_s22  }
 0x1b7   : > { %s674_s12 = scalar_lea.sflag [#allocation8], %s673_s7 }
 0x1b8   : > { %p997_p0 = pnand %p1004_p13, %p1323_p8 }
 0x1ba   : > { %p998_p1 = pneg %p997_p0 }
 0x1bc   : > { %1211 = dma.done.wait (%p998_p1), %s674_s12, 128  }
 0x1bd   : > { %1213 = vsyncadd (%p998_p1), %s674_s12, 4294967168  ;;  %s28_s0 = sadd.s32 1, %s1236_s0   ;;  %s1443_s22 = smov %s1220_s23 }
 0x1be   : > { %p25_p2 = scmp.ge.s32.totalorder %s28_s0, 4   ;;  %s1444_s23 = smov %s1224_s24 }
 0x1bf   : > { %s1445_s24 = smov %s1329_s9  ;;  %s1446_s25 = smov %s1232_s26 }
 0x1c0   : > { %s1447_s26 = smov %s1449_s29  ;;  %27 = sbr.rel (!%p25_p2) target bundleno = 12 (0xc), region = 387 }
 0x1c5   :  { %680 = vsyncpa [#allocation7], 1 }
 0x1c6   :  { %682 = vsyncpa [#allocation7 + $0x1], 1 }
 0x1c7   :  { %683 = vsyncpa [#allocation10], 1 }
 0x1c8   :  { %684 = vsyncpa [#allocation8], 1 }
 0x1c9   :  { %686 = vsyncpa [#allocation8 + $0x1], 1 }
 0x1ca   :  { %687 = vsyncmov [#allocation3] }
 0x1cd   :  { %s688_s6 = vpop.sfrf %687 }
 0x1ce   :  { %p947_p4 = scmp.ne.s32.totalorder %s688_s6, 0 }
 0x1d0   :  { %692 = shalt.err (%p947_p4)  }
 0x1d1   :  { %694 = vsyncmov [#allocation3 + $0x1] }
 0x1d4   :  { %s695_s8 = vpop.sfrf %694 }
 0x1d5   :  { %p948_p8 = scmp.ne.s32.totalorder %s695_s8, 0 }
 0x1d7   :  { %699 = shalt.err (%p948_p8)  }
 0x1d8   :  { %701 = vsyncmov [#allocation3 + $0x2] }
 0x1db   :  { %s702_s9 = vpop.sfrf %701 }
 0x1dc   :  { %p949_p3 = scmp.ne.s32.totalorder %s702_s9, 0 }
 0x1de   :  { %706 = shalt.err (%p949_p3)  }
 0x1df   :  { %708 = vsyncmov [#allocation3 + $0x3] }
 0x1e2   :  { %s709_s0 = vpop.sfrf %708 }
 0x1e3   :  { %p950_p5 = scmp.ne.s32.totalorder %s709_s0, 0 }
 0x1e5   :  { %713 = shalt.err (%p950_p5)  }
 0x1e6   :  { %715 = vsyncmov [#allocation3 + $0x4] }
 0x1e9   :  { %s716_s1 = vpop.sfrf %715 }
 0x1ea   :  { %p951_p6 = scmp.ne.s32.totalorder %s716_s1, 0 }
 0x1ec   :  { %720 = shalt.err (%p951_p6)  }
 0x1ed   :  { %722 = vsyncmov [#allocation3 + $0x5] }
 0x1f0   :  { %s723_s2 = vpop.sfrf %722 }
 0x1f1   :  { %p952_p7 = scmp.ne.s32.totalorder %s723_s2, 0 }
 0x1f3   :  { %727 = shalt.err (%p952_p7)  }
 0x1f4   :  { %729 = vsyncmov [#allocation3 + $0x6] }
 0x1f7   :  { %s730_s3 = vpop.sfrf %729 }
 0x1f8   :  { %p953_p9 = scmp.ne.s32.totalorder %s730_s3, 0 }
 0x1fa   :  { %734 = shalt.err (%p953_p9)  }
 0x1fb   :  { %736 = vsyncmov [#allocation3 + $0x7] }
 0x1fe   :  { %s737_s4 = vpop.sfrf %736 }
 0x1ff   :  { %p954_p10 = scmp.ne.s32.totalorder %s737_s4, 0 }
 0x201   :  { %741 = shalt.err (%p954_p10)  }
 0x202   :  { %743 = vsyncmov [#allocation3 + $0x8] }
 0x205   :  { %s744_s5 = vpop.sfrf %743 }
 0x206   :  { %p955_p11 = scmp.ne.s32.totalorder %s744_s5, 0 }
 0x208   :  { %748 = shalt.err (%p955_p11)  }
 0x209   :  { %750 = vsyncmov [#allocation3 + $0x9] }
 0x20c   :  { %s751_s22 = vpop.sfrf %750 }
 0x20d   :  { %p956_p12 = scmp.ne.s32.totalorder %s751_s22, 0 }
 0x20f   :  { %755 = shalt.err (%p956_p12)  }
 0x210   :  { %757 = vsyncmov [#allocation3 + $0xa] }
 0x213   :  { %s758_s23 = vpop.sfrf %757 }
 0x214   :  { %p957_p13 = scmp.ne.s32.totalorder %s758_s23, 0 }
 0x216   :  { %762 = shalt.err (%p957_p13)  }
 0x217   :  { %764 = vsyncmov [#allocation3 + $0xb] }
 0x21a   :  { %s765_s24 = vpop.sfrf %764 }
 0x21b   :  { %p958_p0 = scmp.ne.s32.totalorder %s765_s24, 0 }
 0x21d   :  { %769 = shalt.err (%p958_p0)  }
 0x21e   :  { %771 = vsyncmov [#allocation3 + $0xc] }
 0x221   :  { %s772_s26 = vpop.sfrf %771 }
 0x222   :  { %p959_p1 = scmp.ne.s32.totalorder %s772_s26, 0 }
 0x224   :  { %776 = shalt.err (%p959_p1)  }
 0x225   :  { %778 = vsyncmov [#allocation3 + $0xd] }
 0x228   :  { %s779_s29 = vpop.sfrf %778 }
 0x229   :  { %p960_p2 = scmp.ne.s32.totalorder %s779_s29, 0 }
 0x22b   :  { %783 = shalt.err (%p960_p2)  }
 0x22c   :  { %785 = vsyncmov [#allocation3 + $0xe] }
 0x22f   :  { %s786_s16 = vpop.sfrf %785 }
 0x230   :  { %p961_p4 = scmp.ne.s32.totalorder %s786_s16, 0 }
 0x232   :  { %790 = shalt.err (%p961_p4)  }
 0x233   :  { %792 = vsyncmov [#allocation3 + $0xf] }
 0x236   :  { %s793_s10 = vpop.sfrf %792 }
 0x237   :  { %p962_p8 = scmp.ne.s32.totalorder %s793_s10, 0 }
 0x239   :  { %797 = shalt.err (%p962_p8)  }

</bundles_post_ra>
